<compile_context>
chip_gen: v7x
topology: tpu7x:2x2x1
jax: 0.10.0
libtpu: 0.0.40
codegen_flags: <defaults>
</compile_context>

<pallas_src>
import math

import jax
import jax.numpy as jnp
from jax.experimental import pallas as pl
from jax.experimental.pallas import tpu as pltpu


def _round_up(x, m):
    return ((x + m - 1) // m) * m


def _fused_matmul_kernel(x_ref, w_ref, o_ref):
    # x_ref: (TILE_N, 16*C)    input tile (conv-spatial folded into the K axis)
    # w_ref: (16*C, D_pad)     fused (depthwise-conv x linear) weight, resident
    # o_ref: (TILE_N, D_pad)   lane-dense output tile
    o_ref[...] = jnp.dot(
        x_ref[...], w_ref[...], preferred_element_type=jnp.float32
    ).astype(o_ref.dtype)


def _pick_tile_n(n, k, d_pad, itemsize, budget_bytes=8 * 1024 * 1024):
    """Largest batch tile (multiple of 8) whose double-buffered VMEM footprint
    (x tile + out tile, x2 buffers, plus resident fused weight x2) fits the
    budget. Conservative enough for v5e's 16 MiB default scoped VMEM."""
    weight_bytes = 2 * k * d_pad * itemsize
    cap = max(8, _round_up(n, 8))
    for cand in (512, 256, 128, 64, 32, 16, 8):
        tile = min(cand, cap)
        tile = _round_up(tile, 8)
        per_tile = 2 * tile * (k + d_pad) * itemsize
        if per_tile + weight_bytes <= budget_bytes:
            return tile
    return 8


def discriminative_basis(x_nchw, conv_weight, linear_weight):
    """x_nchw: (N, C, 4, 4); conv_weight: (C, 1, 4, 4); linear_weight: (D, C)."""
    N, C, H, W = x_nchw.shape
    assert (H, W) == (4, 4), "DiscriminativeBasis expects 4x4 spatial input"
    D = linear_weight.shape[0]
    K = C * H * W  # 16 * C
    dtype = x_nchw.dtype
    itemsize = jnp.dtype(dtype).itemsize

    # ---- Fuse the depthwise conv into the linear weight (done once, in XLA). ----
    wb = conv_weight.reshape(C, H * W)                       # (C, 16)
    wl_t = jnp.transpose(linear_weight)                      # (C, D)
    # W_fused[c*16 + s, d] = wb[c, s] * wl_t[c, d]   (matches x.reshape(N, C*16))
    w_fused = (wb[:, :, None] * wl_t[:, None, :]).reshape(K, D)

    # ---- Pad D to a lane-dense multiple of 128 (unmasked stores). ----
    D_pad = _round_up(D, 128)
    if D_pad != D:
        w_fused = jnp.pad(w_fused, ((0, 0), (0, D_pad - D)))
    w_fused = w_fused.astype(dtype)

    # ---- Flatten x and pad N to a whole number of tiles. ----
    x_flat = x_nchw.reshape(N, K)                            # (N, 16C)
    tile_n = _pick_tile_n(N, K, D_pad, itemsize)
    N_pad = _round_up(N, tile_n)
    if N_pad != N:
        x_flat = jnp.pad(x_flat, ((0, N_pad - N), (0, 0)))

    grid = (N_pad // tile_n,)

    out = pl.pallas_call(
        _fused_matmul_kernel,
        out_shape=jax.ShapeDtypeStruct((N_pad, D_pad), dtype),
        grid_spec=pltpu.PrefetchScalarGridSpec(
            num_scalar_prefetch=0,
            grid=grid,
            in_specs=[
                pl.BlockSpec((tile_n, K), lambda i: (i, 0)),      # x: tiled over N
                pl.BlockSpec((K, D_pad), lambda i: (0, 0)),       # fused W: resident
            ],
            out_specs=pl.BlockSpec((tile_n, D_pad), lambda i: (i, 0)),
        ),
        compiler_params=pltpu.CompilerParams(
            dimension_semantics=("parallel",),   # v7x: shard N tiles across 2 TCs
        ),
        cost_estimate=pl.CostEstimate(
            flops=2 * N_pad * K * D_pad,
            transcendentals=0,
            bytes_accessed=(N_pad * K + K * D_pad + N_pad * D_pad) * itemsize,
        ),
    )(x_flat, w_fused)

    # Strip the N / D padding outside the kernel.
    return out[:N, :D]


def init_params(key, input_channels, output_dimension):
    """MSRInitializer: normal(0, gain/sqrt(fan_in)), gain=1, bias-free layers."""
    k_conv, k_lin = jax.random.split(key)
    # Conv2d(C, C, 4, groups=C): weight (C, 1, 4, 4); FanIn = 1 * 4 * 4 = 16.
    conv_std = 1.0 / math.sqrt(1 * 4 * 4)
    conv_w = conv_std * jax.random.normal(
        k_conv, (input_channels, 1, 4, 4), dtype=jnp.float32
    )
    # Linear(C, D): weight (D, C); FanIn = C.
    lin_std = 1.0 / math.sqrt(input_channels)
    lin_w = lin_std * jax.random.normal(
        k_lin, (output_dimension, input_channels), dtype=jnp.float32
    )
    return conv_w, lin_w


if __name__ == "__main__":
    key = jax.random.PRNGKey(0)
    k_x, k_p = jax.random.split(key)

    N, C, D = 2, 4, 32  # batch, InputChannels, OutputDimension
    x = jax.random.normal(k_x, (N, C, 4, 4), dtype=jnp.float32)  # NCHW
    conv_w, lin_w = init_params(k_p, C, D)

    out = discriminative_basis(x, conv_w, lin_w)
    out = jax.block_until_ready(out)

    # Pure-JAX reference for sanity (unfused: conv reduce, then linear).
    y_ref = jnp.einsum("nchw,chw->nc", x, conv_w[:, 0])
    ref = y_ref @ lin_w.T
    assert out.shape == (N, D)
    assert jnp.allclose(out, ref, atol=1e-5, rtol=1e-5)

    print("KERNEL_OK")
</pallas_src>

<mosaic_0001>
module attributes {stable_mosaic.version = 11 : i64} {
  func.func @_fused_matmul_kernel(%arg0: i32, %arg1: memref<8x64xf32, #tpu.memory_space<vmem>>, %arg2: memref<64x128xf32, #tpu.memory_space<vmem>>, %arg3: memref<8x128xf32, #tpu.memory_space<vmem>>) attributes {dimension_semantics = [#tpu.dimension_semantics<parallel>], iteration_bounds = array<i64: 1>, scalar_prefetch = 0 : i64, scratch_operands = 0 : i64, tpu.core_type = #tpu.core_type<tc>, window_params = [{transform_indices = @transform_0, window_bounds = array<i64: 8, 64>}, {pipeline_mode = #tpu.pipeline_mode<synchronous>, transform_indices = @transform_1, window_bounds = array<i64: 64, 128>}, {transform_indices = @transform_2, window_bounds = array<i64: 8, 128>}]} {
    %c0 = arith.constant 0 : index
    %c0_0 = arith.constant 0 : index
    %0 = vector.load %arg1[%c0, %c0_0] : memref<8x64xf32, #tpu.memory_space<vmem>>, vector<8x64xf32>
    %c0_1 = arith.constant 0 : index
    %c0_2 = arith.constant 0 : index
    %1 = vector.load %arg2[%c0_1, %c0_2] : memref<64x128xf32, #tpu.memory_space<vmem>>, vector<64x128xf32>
    %cst = arith.constant dense<0.000000e+00> : vector<8x128xf32>
    %2 = tpu.matmul %0, %1, %cst {dimension_numbers = #tpu.dot_dimension_numbers<[1], [0], [0], [1], [0, 0, 1, 1], [], []>} : vector<8x64xf32>, vector<64x128xf32>, vector<8x128xf32> -> vector<8x128xf32>
    %c0_3 = arith.constant 0 : index
    %c0_4 = arith.constant 0 : index
    %3 = vector.load %arg3[%c0_3, %c0_4] : memref<8x128xf32, #tpu.memory_space<vmem>>, vector<8x128xf32>
    tpu.vector_store %arg3[%c0_3, %c0_4], %2 {strides = array<i32>} : memref<8x128xf32, #tpu.memory_space<vmem>>, vector<8x128xf32>,
    return
  }
  func.func @transform_0(%arg0: i32) -> (i32, i32) {
    %c0_i32 = arith.constant 0 : i32
    %c0_i32_0 = arith.constant 0 : i32
    return %arg0, %c0_i32 : i32, i32
  }
  func.func @transform_1(%arg0: i32) -> (i32, i32) {
    %c0_i32 = arith.constant 0 : i32
    %c0_i32_0 = arith.constant 0 : i32
    %c0_i32_1 = arith.constant 0 : i32
    return %c0_i32, %c0_i32_0 : i32, i32
  }
  func.func @transform_2(%arg0: i32) -> (i32, i32) {
    %c0_i32 = arith.constant 0 : i32
    %c0_i32_0 = arith.constant 0 : i32
    return %arg0, %c0_i32 : i32, i32
  }
}

</mosaic_0001>

<bundles_post_ra>
// kernel: tpu_custom_call.1
= control target key start
LH: loop header
LB: loop body
LE: loop exit
PB: predicated region body
PF: predicated region fallthrough
CT: control target
= control target key end

     0   :  { %7 = vsyncpa [#allocation3], 0  ;;  %s325_s0 = inlined_call_operand.hbm [shape: f32[8,64], index: 0, kind: input, shape index: {}]   ;;  %s326_s1 = inlined_call_operand.hbm [shape: f32[64,128], index: 1, kind: input, shape index: {}]   ;;  %s327_s2 = inlined_call_operand.hbm [shape: f32[8,128], index: 2, kind: output, shape index: {}]  }
   0x1   :  { %8 = vsyncpa [#allocation6], 0 }
   0x2   :  { %9 = vsyncpa [#allocation4], 0  ;;  %s259_s9 = smov [#allocation2]   ;;  %s260_s11 = smov [#allocation5]  }
   0x3   :  { %s16_s10 = sshll.u32 %s259_s9, 4  ;;  %s25_s12 = sshll.u32 %s260_s11, 4  ;;  %s17_s10 = int_to_ptr.vmem [resolvable:$true] %s16_s10  ;;  %s282_s12 = int_to_ptr.vmem [resolvable:$true] %s25_s12 }
   0x4   :  { %s187_s15 = scalar_lea.hbm %s325_s0, 128 }
   0x5   :  { %p188_p0 = scmp.ne.s32.totalorder %s325_s0, %s187_s15  ;;  %p191_p1 = scmp.lt.u32.totalorder %s187_s15, %s325_s0 }
   0x7   :  { %p193_p2 = pnand %p191_p1, %p188_p0 }
   0x9   :  { %196 = shalt.err (!%p193_p2)
}
   0xa   :  { %s197_s20 = scalar_lea.vmem %s17_s10, 128  ;;  %p202_p4 = scmp.lt.s32.totalorder %s17_s10, %s17_s10 }
   0xb   :  { %p198_p3 = scmp.ne.s32.totalorder %s17_s10, %s197_s20  ;;  %p203_p5 = scmp.lt.s32.totalorder %s197_s20, %s197_s20 }
   0xd   :  { %p204_p6 = por %p203_p5, %p202_p4 }
   0xf   :  { %p205_p7 = pnand %p204_p6, %p198_p3 }
  0x11   :  { %208 = shalt.err (!%p205_p7)
}
  0x12   :  { %19 = dma.hbm_to_vmem [thread:$0]  %s325_s0, 128, %s17_s10, [#allocation3]  }
  0x13   :  { %s209_s25 = scalar_lea.hbm %s326_s1, 1024 }
  0x14   :  { %p210_p8 = scmp.ne.s32.totalorder %s326_s1, %s209_s25  ;;  %p213_p9 = scmp.lt.u32.totalorder %s209_s25, %s326_s1 }
  0x16   :  { %p215_p10 = pnand %p213_p9, %p210_p8 }
  0x18   :  { %218 = shalt.err (!%p215_p10)
}
  0x19   :  { %s219_s30 = scalar_lea.vmem %s282_s12, 1024  ;;  %p224_p12 = scmp.lt.s32.totalorder %s282_s12, %s282_s12 }
  0x1a   :  { %p220_p11 = scmp.ne.s32.totalorder %s282_s12, %s219_s30  ;;  %p225_p13 = scmp.lt.s32.totalorder %s219_s30, %s219_s30 }
  0x1c   :  { %p226_p0 = por %p225_p13, %p224_p12 }
  0x1e   :  { %p227_p1 = pnand %p226_p0, %p220_p11 }
  0x20   :  { %230 = shalt.err (!%p227_p1)
}
  0x21   :  { %s261_s0 = smov 128   ;;  %s262_s3 = smov 8  }
  0x22   :  { %31 = dma.hbm_to_vmem [thread:$0]  %s326_s1, 1024, %s282_s12, [#allocation6], %s261_s0, %s261_s0, %s262_s3  }
  0x23   :  { %253 = dma.done.wait [#allocation3], 128  }
  0x24   :  { %254 = vsyncadd [#allocation3], 4294967168 }
  0x25   :  { %255 = dma.done.wait [#allocation6], 1024  }
  0x26   :  { %256 = vsyncadd [#allocation6], 4294966272  ;;  %v263_v0 = vmov 0.0|0.0   ;;  %vm264_vm0 = vmmov 0   ;;  %v265_v1 = vmov 0.0   ;;  %v39_v2 = vld [vmem:[#allocation5] sm:$0xff] }
  0x27   :  { %167 = vmatprep.subr.bf16.mxu0 %v263_v0  ;;  %164 = vmatprep.mubr.msk.f32.mxu0 %vm264_vm0, %v265_v1  ;;  %v40_v3 = vld [vmem:[#allocation5 + $0x8] sm:$0xff]  ;;  %v41_v4 = vld [vmem:[#allocation5 + $0x10] sm:$0xff]  ;;  %v42_v6 = vld [vmem:[#allocation5 + $0x18] sm:$0xff]  ;;  %vm47_vm1 = vcmask 523264   ;;  %s266_s1 = smov [#allocation7]  }
  0x28   :  { %v168_v5 = vpack.c.bf16 %v40_v3, %v39_v2  ;;  %v171_v7 = vpack.c.bf16 %v42_v6, %v41_v4  ;;  %v43_v8 = vld [vmem:[#allocation5 + $0x20] sm:$0xff]  ;;  %v44_v9 = vld [vmem:[#allocation5 + $0x28] sm:$0xff]  ;;  %v45_v11 = vld [vmem:[#allocation5 + $0x30] sm:$0xff]  ;;  %s128_s6 = sshll.u32 %s266_s1, 4  ;;  %s129_s6 = int_to_ptr.vmem [resolvable:$true] %s128_s6 }
  0x29   :  { %v174_v10 = vpack.c.bf16 %v44_v9, %v43_v8  ;;  %v46_v12 = vld [vmem:[#allocation5 + $0x38] sm:$0xff]  ;;  %s231_s7 = scalar_lea.vmem %s129_s6, 128  ;;  %p236_p3 = scmp.lt.s32.totalorder %s129_s6, %s129_s6 }
  0x2a   :  { %169 = vmatpush3.bf16.msra.mxu0 %v168_v5  ;;  %v177_v13 = vpack.c.bf16 %v46_v12, %v45_v11  ;;  %v38_v14 = vld [vmem:[#allocation2] sm:$0xff]  ;;  %p232_p2 = scmp.ne.s32.totalorder %s129_s6, %s231_s7  ;;  %p237_p4 = scmp.lt.s32.totalorder %s231_s7, %s231_s7 }
  0x2b   :  { %170 = vmatprep.subr.bf16.mxu0 %v263_v0 }
  0x2c   :  { %p238_p5 = por %p237_p4, %p236_p3 }
  0x2e   :  { %172 = vmatpush3.bf16.msra.mxu0 %v171_v7  ;;  %p239_p6 = pnand %p238_p5, %p232_p2 }
  0x2f   :  { %173 = vmatprep.subr.bf16.mxu0 %v263_v0 }
  0x32   :  { %175 = vmatpush3.bf16.msra.mxu0 %v174_v10 }
  0x33   :  { %176 = vmatprep.subr.bf16.mxu0 %v263_v0 }
  0x36   :  { %178 = vmatpush3.bf16.msra.mxu0 %v177_v13 }
  0x39   :  { %165 = vmatmul.mubr.msk.f32.vlgmr.msra.gmra.mrb[0].mxu0 %vm47_vm1, %v38_v14 }
 0x10c   :  { %v117_v15 = vpop.f32.mrb[0].mxu0 }
 0x10d   :  { %121 = vst [vmem:[#allocation7] sm:$0xff] %v117_v15  ;;  %v166_v16 = vpop.f32.mrb[1].mxu0 }
 0x10e   :  { %242 = shalt.err (!%p239_p6)
}
 0x10f   :  { %s243_s10 = scalar_lea.hbm %s327_s2, 128 }
 0x110   :  { %p244_p7 = scmp.ne.s32.totalorder %s327_s2, %s243_s10  ;;  %p247_p8 = scmp.lt.u32.totalorder %s243_s10, %s327_s2 }
 0x112   :  { %p249_p9 = pnand %p247_p8, %p244_p7 }
 0x114   :  { %252 = shalt.err (!%p249_p9)
}
 0x115   :  { %131 = dma.vmem_to_hbm [thread:$0]  %s129_s6, 128, %s327_s2, [#allocation4]  }
 0x116   :  { %257 = dma.done.wait [#allocation4], 128  }
 0x117   :  { %258 = vsyncadd [#allocation4], 4294967168 }
 0x118   :  { %135 = vsyncpa [#allocation3], 1 }
 0x119   :  { %136 = vsyncpa [#allocation6], 1 }
 0x11a   :  { %137 = vsyncpa [#allocation4], 1 }

</bundles_post_ra>
